<compile_context>
chip_gen: v7x
topology: tpu7x:2x2x1
jax: 0.10.0
libtpu: 0.0.40
codegen_flags: <defaults>
</compile_context>

<pallas_src>
import math

import jax
import jax.numpy as jnp
from jax.experimental import pallas as pl
from jax.experimental.pallas import tpu as pltpu


def _cdiv(a, b):
    return -(-a // b)


def _round_up(n, m):
    return _cdiv(n, m) * m


# ----------------------------------------------------------------------------
# Pallas kernel: one fused matmul (+ f32 bias) per (batch, pixel-tile) point.
# ----------------------------------------------------------------------------
def _anchor3d_head_kernel(x_ref, w_ref, b_ref, o_ref):
    # x_ref: (C, t_hw)          pixels tile of the input (f32 or bf16)
    # w_ref: (C_total_pad, C)   fused head weights (f32 or bf16)
    # b_ref: (C_total_pad, 1)   fused biases (always f32; bias add stays f32)
    # o_ref: (C_total_pad, t_hw) fused f32 output tile
    acc = jnp.dot(w_ref[...], x_ref[...], preferred_element_type=jnp.float32)
    o_ref[...] = (acc + b_ref[...]).astype(o_ref.dtype)


def _fused_head_matmul(x_rows, w_cat, b_cat, *, max_tile=2048):
    """Fused 3-head 1x1 conv over a (B, C, HW) pixel array.

    Returns the fused (B, C_total_pad, HW) float32 output (no padding of the
    pixel axis; the ragged last tile is handled by Pallas write masking).
    """
    B, C, HW = x_rows.shape
    c_total_pad = w_cat.shape[0]

    # Lane-dense pixel tile: a multiple of 128, capped at max_tile.  Bigger
    # tiles amortize the ~0.35us per-grid-step overhead and give large DMAs.
    t_hw = int(min(max_tile, _round_up(HW, 128)))
    # v7x has 2 TensorCores; 'parallel' only helps with >=2 grid blocks.  When
    # B == 1 and one tile would cover all pixels, split the pixel axis in two.
    if B == 1 and _cdiv(HW, t_hw) == 1 and HW > 128:
        t_hw = int(_round_up(_cdiv(HW, 2), 128))

    grid = (B, _cdiv(HW, t_hw))

    # VMEM budget: double-buffered input + output blocks plus resident fused
    # weights/bias, + 25% margin.  Stays <=32 MiB (v7x scoped default) unless
    # the computed need genuinely exceeds it.
    itemsize_x = jnp.dtype(x_rows.dtype).itemsize
    itemsize_w = jnp.dtype(w_cat.dtype).itemsize
    block_bytes = itemsize_x * C * t_hw + 4 * c_total_pad * t_hw
    weight_bytes = itemsize_w * c_total_pad * C + 4 * c_total_pad
    vmem_need = 2 * block_bytes + weight_bytes
    vmem_limit = int(min(max(int(vmem_need * 1.25), 16 * 1024 * 1024),
                         48 * 1024 * 1024))

    cost = pl.CostEstimate(
        flops=2 * B * c_total_pad * C * HW,
        transcendentals=0,
        bytes_accessed=(itemsize_x * B * C * HW
                        + itemsize_w * c_total_pad * C
                        + 4 * c_total_pad
                        + 4 * B * c_total_pad * HW),
    )

    out = pl.pallas_call(
        _anchor3d_head_kernel,
        out_shape=jax.ShapeDtypeStruct((B, c_total_pad, HW), jnp.float32),
        grid_spec=pltpu.PrefetchScalarGridSpec(
            num_scalar_prefetch=0,
            grid=grid,
            in_specs=[
                # (B, C, HW): squeeze batch, full channels, pixel tile.
                pl.BlockSpec((None, C, t_hw), lambda b, j: (b, 0, j)),
                # Fused weights / biases: whole arrays, resident in VMEM.
                pl.BlockSpec((c_total_pad, C), lambda b, j: (0, 0)),
                pl.BlockSpec((c_total_pad, 1), lambda b, j: (0, 0)),
            ],
            out_specs=pl.BlockSpec((None, c_total_pad, t_hw),
                                   lambda b, j: (b, 0, j)),
        ),
        compiler_params=pltpu.CompilerParams(
            dimension_semantics=("parallel", "parallel"),
            vmem_limit_bytes=vmem_limit,
        ),
        cost_estimate=cost,
    )(x_rows, w_cat, b_cat)
    return out


# ----------------------------------------------------------------------------
# Anchor3DHead (synthetic, deterministic parameters)
# ----------------------------------------------------------------------------
class Anchor3DHeadPallas:
    """JAX/Pallas implementation of Anchor3DHead.forward.

    Only the forward pass (forward_single over a list of feature maps) is
    implemented; anchor generation / bbox coding are not used in forward().
    """

    def __init__(self, num_classes, in_channels, feat_channels=256,
                 use_direction_classifier=True, num_sizes=1, num_rotations=2,
                 box_code_size=7, compute_dtype=jnp.float32,
                 max_tile=2048, fuse_level_hw=8192, seed=0):
        self.num_classes = num_classes
        self.in_channels = in_channels
        self.feat_channels = feat_channels
        self.use_direction_classifier = use_direction_classifier
        # num_base_anchors = num_rotations * num_sizes (Anchor3DRangeGenerator)
        self.num_anchors = num_rotations * num_sizes
        self.box_code_size = box_code_size  # DeltaXYZWLHRBBoxCoder.code_size
        self.compute_dtype = jnp.dtype(compute_dtype)
        self.max_tile = int(max_tile)
        self.fuse_level_hw = int(fuse_level_hw)

        self.cls_out_channels = self.num_anchors * self.num_classes
        self.reg_out_channels = self.num_anchors * self.box_code_size
        self.dir_out_channels = self.num_anchors * 2

        key = jax.random.PRNGKey(seed)
        ks = jax.random.split(key, 6)

        def conv1x1_params(kw, kb, c_in, c_out):
            # mimic nn.Conv2d kaiming-uniform default init (deterministic);
            # weights kept in PyTorch (C_out, C_in) orientation, f32 master.
            bound = 1.0 / math.sqrt(c_in)
            w = jax.random.uniform(kw, (c_out, c_in), jnp.float32, -bound, bound)
            b = jax.random.uniform(kb, (c_out, 1), jnp.float32, -bound, bound)
            return w, b

        self.w_cls, self.b_cls = conv1x1_params(ks[0], ks[1], feat_channels,
                                                self.cls_out_channels)
        self.w_reg, self.b_reg = conv1x1_params(ks[2], ks[3], feat_channels,
                                                self.reg_out_channels)
        self.w_dir, self.b_dir = conv1x1_params(ks[4], ks[5], feat_channels,
                                                self.dir_out_channels)

        # Fuse all heads into a single weight/bias (rows = [cls | reg | dir]).
        heads = [(self.w_cls, self.b_cls, self.cls_out_channels),
                 (self.w_reg, self.b_reg, self.reg_out_channels)]
        if self.use_direction_classifier:
            heads.append((self.w_dir, self.b_dir, self.dir_out_channels))
        w_cat = jnp.concatenate([h[0] for h in heads], axis=0)
        b_cat = jnp.concatenate([h[1] for h in heads], axis=0)
        self.head_out_channels = tuple(h[2] for h in heads)
        self.c_total = int(w_cat.shape[0])

        # Pad fused output rows to a sublane multiple (8 for f32, 16 for bf16)
        # with zero rows so stores stay full-width for any head configuration.
        sublane = 8 * 4 // self.compute_dtype.itemsize
        c_total_pad = _round_up(self.c_total, sublane)
        if c_total_pad != self.c_total:
            w_cat = jnp.pad(w_cat, ((0, c_total_pad - self.c_total), (0, 0)))
            b_cat = jnp.pad(b_cat, ((0, c_total_pad - self.c_total), (0, 0)))
        self.c_total_pad = c_total_pad

        # Weights in the compute dtype (bf16 halves dominant HBM read traffic);
        # bias stays f32 so the bias add runs in f32 on every generation.
        self.w_cat = w_cat.astype(self.compute_dtype)
        self.b_cat = b_cat

    # ------------------------------------------------------------------ #
    def _split_heads(self, out_rows, H, W):
        """(B, C_total_pad, H*W) -> per-head NCHW outputs (drops pad rows)."""
        B = out_rows.shape[0]
        outs = []
        off = 0
        for c in self.head_out_channels:
            outs.append(out_rows[:, off:off + c, :].reshape(B, c, H, W))
            off += c
        cls_score, bbox_pred = outs[0], outs[1]
        dir_cls_preds = outs[2] if self.use_direction_classifier else None
        return [cls_score, bbox_pred, dir_cls_preds]

    def forward_single(self, x):
        B, C, H, W = x.shape
        x_rows = x.reshape(B, C, H * W).astype(self.compute_dtype)
        out = _fused_head_matmul(x_rows, self.w_cat, self.b_cat,
                                 max_tile=self.max_tile)
        return self._split_heads(out, H, W)

    def forward(self, feats):
        # multi_apply: list of per-level results -> tuple of per-output lists.
        n = len(feats)
        B = feats[0].shape[0]
        C = feats[0].shape[1]
        hws = [int(x.shape[2] * x.shape[3]) for x in feats]

        # Small levels are launch-overhead bound: run them through ONE
        # pallas_call by concatenating their pixel axes (the op is strictly
        # per-pixel so mixed-level tiles are fine).  Large levels run alone —
        # there the concat copy would cost more HBM traffic than it saves.
        small = [i for i in range(n) if hws[i] <= self.fuse_level_hw]
        fused_rows = [None] * n
        if len(small) >= 2:
            x_cat = jnp.concatenate(
                [feats[i].reshape(B, C, hws[i]).astype(self.compute_dtype)
                 for i in small], axis=-1)
            out_cat = _fused_head_matmul(x_cat, self.w_cat, self.b_cat,
                                         max_tile=self.max_tile)
            off = 0
            for i in small:
                fused_rows[i] = out_cat[:, :, off:off + hws[i]]
                off += hws[i]
        for i in range(n):
            if fused_rows[i] is None:
                x_rows = feats[i].reshape(B, C, hws[i]).astype(self.compute_dtype)
                fused_rows[i] = _fused_head_matmul(x_rows, self.w_cat,
                                                   self.b_cat,
                                                   max_tile=self.max_tile)

        results = []
        for i, x in enumerate(feats):
            H, W = int(x.shape[2]), int(x.shape[3])
            results.append(self._split_heads(fused_rows[i], H, W))
        cls_scores = [r[0] for r in results]
        bbox_preds = [r[1] for r in results]
        dir_preds = [r[2] for r in results]
        return cls_scores, bbox_preds, dir_preds


# ----------------------------------------------------------------------------
# Main
# ----------------------------------------------------------------------------
if __name__ == "__main__":
    # TODO(synk): anchor generation (Anchor3DRangeGenerator) and box
    # encode/decode (DeltaXYZWLHRBBoxCoder) are not exercised by forward() and
    # are intentionally not ported.
    B, C = 2, 32
    num_classes = 3

    head = Anchor3DHeadPallas(num_classes=num_classes, in_channels=C,
                              feat_channels=C, use_direction_classifier=True)

    key = jax.random.PRNGKey(0)
    k0, k1 = jax.random.split(key)
    # Level 0: tile-aligned feature map.  Level 1: H*W=100 exercises the
    # ragged (non-divisible) pixel-tile path typical of real BEV grids.
    x0 = jax.random.normal(k0, (B, C, 16, 16), dtype=jnp.float32)
    x1 = jax.random.normal(k1, (B, C, 10, 10), dtype=jnp.float32)
    feats = [x0, x1]

    cls_scores, bbox_preds, dir_preds = head.forward(feats)
    cls_scores = [jax.block_until_ready(t) for t in cls_scores]
    bbox_preds = [jax.block_until_ready(t) for t in bbox_preds]
    dir_preds = [jax.block_until_ready(t) for t in dir_preds]

    # Correctness check against a plain-JAX 1x1 conv reference.
    def ref_conv1x1(x_nchw, w, b):
        # (B,C,H,W) x (Cout,C) -> (B,Cout,H,W)
        y = jnp.einsum("bchw,oc->bohw", x_nchw, w)
        return y + b.reshape(1, -1, 1, 1)

    for lvl, x in enumerate(feats):
        Hl, Wl = x.shape[2], x.shape[3]
        ref_cls = ref_conv1x1(x, head.w_cls, head.b_cls)
        ref_reg = ref_conv1x1(x, head.w_reg, head.b_reg)
        ref_dir = ref_conv1x1(x, head.w_dir, head.b_dir)

        assert cls_scores[lvl].shape == (B, head.cls_out_channels, Hl, Wl)
        assert bbox_preds[lvl].shape == (B, head.reg_out_channels, Hl, Wl)
        assert dir_preds[lvl].shape == (B, head.dir_out_channels, Hl, Wl)
        assert jnp.allclose(cls_scores[lvl], ref_cls, atol=1e-5)
        assert jnp.allclose(bbox_preds[lvl], ref_reg, atol=1e-5)
        assert jnp.allclose(dir_preds[lvl], ref_dir, atol=1e-5)

    # B=1 single-level path: exercises the v7x ">=2 parallel grid blocks"
    # pixel-axis split.
    cls1, reg1, dir1 = head.forward([x0[:1]])
    jax.block_until_ready(cls1[0])
    assert cls1[0].shape == (1, head.cls_out_channels, 16, 16)
    assert jnp.allclose(cls1[0], ref_conv1x1(x0[:1], head.w_cls, head.b_cls),
                        atol=1e-5)
    assert jnp.allclose(reg1[0], ref_conv1x1(x0[:1], head.w_reg, head.b_reg),
                        atol=1e-5)

    # bf16-compute variant (same deterministic weights, f32 accumulate/bias):
    # halves the dominant HBM read traffic; validated with looser tolerance.
    head_bf16 = Anchor3DHeadPallas(num_classes=num_classes, in_channels=C,
                                   feat_channels=C,
                                   use_direction_classifier=True,
                                   compute_dtype=jnp.bfloat16)
    cls_b, reg_b, dir_b = head_bf16.forward(feats)
    cls_b = [jax.block_until_ready(t) for t in cls_b]
    for lvl, x in enumerate(feats):
        ref_cls = ref_conv1x1(x, head_bf16.w_cls, head_bf16.b_cls)
        ref_reg = ref_conv1x1(x, head_bf16.w_reg, head_bf16.b_reg)
        assert cls_b[lvl].shape == ref_cls.shape
        assert jnp.allclose(cls_b[lvl], ref_cls, rtol=5e-2, atol=5e-2)
        assert jnp.allclose(reg_b[lvl], ref_reg, rtol=5e-2, atol=5e-2)

    print("KERNEL_OK")
</pallas_src>

<mosaic_0001>
module attributes {stable_mosaic.version = 11 : i64} {
  func.func @_anchor3d_head_kernel(%arg0: i32, %arg1: i32, %arg2: memref<1x32x384xf32, #tpu.memory_space<vmem>>, %arg3: memref<24x32xf32, #tpu.memory_space<vmem>>, %arg4: memref<24x1xf32, #tpu.memory_space<vmem>>, %arg5: memref<1x24x384xf32, #tpu.memory_space<vmem>>) attributes {dimension_semantics = [#tpu.dimension_semantics<parallel>, #tpu.dimension_semantics<parallel>], iteration_bounds = array<i64: 2, 1>, scalar_prefetch = 0 : i64, scratch_operands = 0 : i64, tpu.core_type = #tpu.core_type<tc>, window_params = [{transform_indices = @transform_0, window_bounds = array<i64: 1, 32, 384>}, {pipeline_mode = #tpu.pipeline_mode<synchronous>, transform_indices = @transform_1, window_bounds = array<i64: 24, 32>}, {pipeline_mode = #tpu.pipeline_mode<synchronous>, transform_indices = @transform_2, window_bounds = array<i64: 24, 1>}, {transform_indices = @transform_3, window_bounds = array<i64: 1, 24, 384>}]} {
    %c0 = arith.constant 0 : index
    %c0_0 = arith.constant 0 : index
    %0 = vector.load %arg3[%c0, %c0_0] : memref<24x32xf32, #tpu.memory_space<vmem>>, vector<24x32xf32>
    %c0_1 = arith.constant 0 : index
    %c0_2 = arith.constant 0 : index
    %c0_3 = arith.constant 0 : index
    %1 = vector.load %arg2[%c0_1, %c0_2, %c0_3] : memref<1x32x384xf32, #tpu.memory_space<vmem>>, vector<1x32x384xf32>
    %2 = vector.shape_cast %1 : vector<1x32x384xf32> to vector<32x384xf32>
    %cst = arith.constant dense<0.000000e+00> : vector<24x384xf32>
    %3 = tpu.matmul %0, %2, %cst {dimension_numbers = #tpu.dot_dimension_numbers<[1], [0], [0], [1], [0, 0, 1, 1], [], []>} : vector<24x32xf32>, vector<32x384xf32>, vector<24x384xf32> -> vector<24x384xf32>
    %c0_4 = arith.constant 0 : index
    %c0_5 = arith.constant 0 : index
    %4 = vector.load %arg4[%c0_4, %c0_5] : memref<24x1xf32, #tpu.memory_space<vmem>>, vector<24x1xf32>
    %5 = vector.broadcast %4 : vector<24x1xf32> to vector<24x384xf32>
    %6 = arith.addf %3, %5 : vector<24x384xf32>
    %c0_6 = arith.constant 0 : index
    %c0_7 = arith.constant 0 : index
    %c0_8 = arith.constant 0 : index
    %7 = vector.load %arg5[%c0_6, %c0_7, %c0_8] : memref<1x24x384xf32, #tpu.memory_space<vmem>>, vector<1x24x384xf32>
    %8 = vector.shape_cast %7 : vector<1x24x384xf32> to vector<24x384xf32>
    %9 = vector.shape_cast %6 : vector<24x384xf32> to vector<1x24x384xf32>
    tpu.vector_store %arg5[%c0_6, %c0_7, %c0_8], %9 {strides = array<i32>} : memref<1x24x384xf32, #tpu.memory_space<vmem>>, vector<1x24x384xf32>,
    return
  }
  func.func @transform_0(%arg0: i32, %arg1: i32) -> (i32, i32, i32) {
    %c0_i32 = arith.constant 0 : i32
    %c0_i32_0 = arith.constant 0 : i32
    return %arg0, %c0_i32, %arg1 : i32, i32, i32
  }
  func.func @transform_1(%arg0: i32, %arg1: i32) -> (i32, i32) {
    %c0_i32 = arith.constant 0 : i32
    %c0_i32_0 = arith.constant 0 : i32
    %c0_i32_1 = arith.constant 0 : i32
    return %c0_i32, %c0_i32_0 : i32, i32
  }
  func.func @transform_2(%arg0: i32, %arg1: i32) -> (i32, i32) {
    %c0_i32 = arith.constant 0 : i32
    %c0_i32_0 = arith.constant 0 : i32
    %c0_i32_1 = arith.constant 0 : i32
    return %c0_i32, %c0_i32_0 : i32, i32
  }
  func.func @transform_3(%arg0: i32, %arg1: i32) -> (i32, i32, i32) {
    %c0_i32 = arith.constant 0 : i32
    %c0_i32_0 = arith.constant 0 : i32
    return %arg0, %c0_i32, %arg1 : i32, i32, i32
  }
}

</mosaic_0001>

<bundles_post_ra>
// kernel: tpu_custom_call.1
= control target key start
LH: loop header
LB: loop body
LE: loop exit
PB: predicated region body
PF: predicated region fallthrough
CT: control target
= control target key end

     0   :  { %8 = vsyncpa [#allocation3], 0  ;;  %s998_s0 = inlined_call_operand.hbm [shape: f32[2,32,356], index: 0, kind: input, shape index: {}]   ;;  %s999_s1 = inlined_call_operand.vmem [shape: f32[24,32], index: 1, kind: input, shape index: {}]   ;;  %s1000_s2 = inlined_call_operand.vmem [shape: f32[24,1], index: 2, kind: input, shape index: {}]   ;;  %s1001_s3 = inlined_call_operand.hbm [shape: f32[2,24,356], index: 3, kind: output, shape index: {}]  }
   0x1   :  { %10 = vsyncpa [#allocation3 + $0x1], 0 }
   0x2   :  { %11 = vsyncpa [#allocation4], 0 }
   0x3   :  { %13 = vsyncpa [#allocation4 + $0x1], 0  ;;  %s801_s12 = smov 0   ;;  %s803_s13 = smov 0  }
   0x4   :  { %s805_s14 = smov 0   ;;  %s807_s15 = smov 0  }
   0x5   :  { %s809_s16 = smov 0   ;;  %s811_s17 = smov 0  }
   0x6 LB: > { %s527_s18 = sadd.s32 4294967295, %s769_s17   ;;  %s528_s19 = sadd.s32 4294967294, %s769_s17   ;;  %s769_s17 = sphi %s811_s17, %s19_s17   ;;  %s765_s16 = sphi %s809_s16, %s1016_s16   ;;  %s761_s15 = sphi %s807_s15, %s1015_s15   ;;  %s757_s14 = sphi %s805_s14, %s1014_s14   ;;  %s753_s13 = sphi %s803_s13, %s1013_s13   ;;  %s749_s12 = sphi %s801_s12, %s1012_s12  }
   0x7   : > { %s31_s20 = sadd.s32 1, %s765_s16  ;;  %s40_s21 = sadd.s32 1, %s757_s14 }
   0x8   : > { %p33_p0 = scmp.ge.s32.totalorder %s31_s20, 2  ;;  %p47_p1 = scmp.ne.s32.totalorder %s757_s14, %s753_s13 }
   0x9   : > { %p48_p2 = scmp.eq.s32.totalorder %s769_s17, 0  ;;  %p53_p3 = scmp.ne.s32.totalorder %s753_s13, %s749_s12 }
   0xa   : > { %s1018_s20 = smov (%p33_p0, %s31_s20), 0  ;;  %p54_p5 = scmp.eq.s32.totalorder %s527_s18, 0 }
   0xb   : > { %p842_p4 = por %p48_p2, %p47_p1  ;;  %s35_s23 = ssub.s32 %s765_s16, %s1018_s20 }
   0xc   : > { %p121_p6 = scmp.eq.s32.totalorder %s527_s18, 1  ;;  %p38_p7 = scmp.eq.s32.totalorder %s35_s23, 0 }
   0xd   : > { %p848_p8 = por %p54_p5, %p53_p3  ;;  %p127_p10 = scmp.eq.s32.totalorder %s528_s19, 1 }
   0xe   : > { %p852_p9 = por %p121_p6, %p47_p1  ;;  %p597_p13 = scmp.lt.s32.totalorder %s769_s17, 2 }
   0xf   : > { %s857_s26 = scalar_select %p38_p7, %s757_s14, %s40_s21  }
  0x10   : > { %s1005_s25 = scalar_select %p852_p9, 1, 0 }
  0x11   : > { %p859_p11 = por %p127_p10, %p53_p3  ;;  %s153_s28 = sand.u32 1, %s757_s14  }
  0x12   : > { %s580_s29 = smul.u32 96, %s153_s28  ;;  %p869_p0 = pnand %p597_p13, %p842_p4 }
  0x13   : > { %s1006_s27 = scalar_select %p859_p11, 1, 0 }
  0x14   : > { %s581_s30 = smul.u32 1536, %s765_s16  ;;  %s157_s8 = scalar_lea.vmem [#allocation2], %s580_s29 }
  0x15   : > { %s166_s9 = sshll.u32 %s157_s8, 4  ;;  %s881_s10 = scalar_lea.sflag [#allocation3], %s153_s28  ;;  %s878_s9 = int_to_ptr.vmem [resolvable:$true] %s166_s9 }
  0x16   : > { %s876_s7 = scalar_lea.hbm %s998_s0, %s581_s30  ;;  %p659_p3 = pneg %p869_p0 }
  0x17   : > { %s657_s11 = scalar_lea.hbm %s876_s7, 1536  ;;  %s662_s21 = scalar_lea.hbm %s998_s0, 3072 }
  0x18   : > { %p658_p2 = scmp.ne.s32.totalorder %s876_s7, %s657_s11  ;;  %p663_p6 = scmp.lt.u32.totalorder %s876_s7, %s998_s0 }
  0x19   : > { %p664_p7 = scmp.lt.u32.totalorder %s662_s21, %s657_s11  ;;  %p666_p13 = scmp.lt.u32.totalorder %s657_s11, %s876_s7 }
  0x1a   : > { %p660_p4 = pnand %p659_p3, %p658_p2 }
  0x1b   : > { %p665_p10 = por %p664_p7, %p663_p6 }
  0x1c   : > { %p661_p5 = pneg %p660_p4 }
  0x1d   : > { %p667_p12 = por %p666_p13, %p665_p10 }
  0x1f   : > { %p668_p1 = pnand %p667_p12, %p661_p5 }
  0x21   : > { %671 = shalt.err (!%p668_p1)
}
  0x22   : > { %s672_s28 = scalar_lea.vmem %s878_s9, 1536  ;;  %s771_s29 = smov [#allocation2]  }
  0x23   : > { %p673_p2 = scmp.ne.s32.totalorder %s878_s9, %s672_s28  ;;  %s677_s30 = sshll.u32 %s771_s29, 4  ;;  %s678_s30 = int_to_ptr.vmem [resolvable:$false] %s677_s30 }
  0x24   : > { %s679_s5 = scalar_lea.vmem %s678_s30, 3072  ;;  %p680_p9 = scmp.lt.s32.totalorder %s878_s9, %s678_s30 }
  0x25   : > { %p675_p4 = pnand %p673_p2, %p659_p3  ;;  %p681_p6 = scmp.lt.s32.totalorder %s679_s5, %s672_s28 }
  0x27   : > { %p676_p11 = pneg %p675_p4  ;;  %p682_p7 = por %p681_p6, %p680_p9 }
  0x29   : > { %p683_p10 = pnand %p682_p7, %p676_p11 }
  0x2b   : > { %686 = shalt.err (!%p683_p10)
}
  0x2c   : > { %s772_s6 = smov 384   ;;  %s773_s8 = smov 24  }
  0x2d   : > { %592 = dma.hbm_to_vmem [thread:$0]  (!%p869_p0), %s876_s7, 1536, %s878_s9, %s881_s10, %s772_s6, %s772_s6, %s773_s8  }
  0x2e   : > { %p174_p12 = scmp.lt.s32.totalorder %s769_s17, 3  ;;  %p1008_p1 = scmp.ge.s32.totalorder %s769_s17, 1 }
  0x30   : > { %p175_p3 = pnand %p1008_p1, %p174_p12 }
  0x31   : > { %s913_s11 = sand.u32 (!%p175_p3), 1, %s753_s13  }
  0x32   : > { %178 = sbr.rel (%p175_p3) target bundleno = 308 (0x134), region = 32  ;;  %s181_s19 = scalar_lea.sflag (!%p175_p3), [#allocation3], %s913_s11 }
  0x33   : > { %s582_s18 = smul.u32 (!%p175_p3), 96, %s913_s11 }
  0x35   : > { %s184_s21 = scalar_lea.vmem (!%p175_p3), [#allocation2], %s582_s18 }
  0x39   : > { %740 = dma.done.wait (%p848_p8), %s181_s19, 1536  }
  0x3a   : > { %742 = vsyncadd (%p848_p8), %s181_s19, 4294965760  ;;  %v774_v0 = vmov 0.0|0.0   ;;  %v775_v1 = vmov 0.0   ;;  %vm776_vm0 = vmmov 0   ;;  %v777_v2 = vmov 0   ;;  %v213_v3 = vld [vmem:[%s184_s21 + $0x8] sm:$0xff] }
  0x3b   : > { %574 = vmatprep.subr.bf16.mxu1 %v774_v0  ;;  %316 = vmatprep.mubr.f32.mxu0 %v775_v1  ;;  %v216_v4 = vld [vmem:[%s184_s21 + $0x20] sm:$0xff]  ;;  %v215_v7 = vld [vmem:[%s184_s21 + $0x18] sm:$0xff]  ;;  %v214_v8 = vld [vmem:[%s184_s21 + $0x10] sm:$0xff]  ;;  %vm242_vm1 = vcmask 261120   ;;  %s583_s8 = smul.u32 72, %s913_s11  ;;  %s425_s7 = scalar_lea.sflag [#allocation4], %s913_s11 }
  0x3c   : > { %557 = vmatprep.mubr.msk.f32.mxu1 %vm776_vm0, %v775_v1  ;;  %655 = vset.pattern.permute.xlu0 %v777_v2  ;;  %v212_v5 = vld [vmem:[%s184_s21] sm:$0xff]  ;;  %v566_v6 = vpack.c.bf16 %v216_v4, %v213_v3  ;;  %v217_v9 = vld [vmem:[%s184_s21 + $0x28] sm:$0xff]  ;;  %v219_v12 = vld [vmem:[%s184_s21 + $0x38] sm:$0xff]  ;;  %p1009_p9 = scmp.ne.s32.totalorder %s1005_s25, 0  ;;  %s778_s10 = smov [#allocation5]  }
  0x3d   : > { %656 = vset.pattern.permute.xlu1 %v777_v2  ;;  %v568_v10 = vpack.c.bf16 %v215_v7, %v212_v5  ;;  %v575_v11 = vpack.c.bf16 %v217_v9, %v214_v8  ;;  %v222_v13 = vld [vmem:[%s184_s21 + $0x50] sm:$0xff]  ;;  %v221_v16 = vld [vmem:[%s184_s21 + $0x48] sm:$0xff]  ;;  %v220_v17 = vld [vmem:[%s184_s21 + $0x40] sm:$0xff]  ;;  %s206_s18 = scalar_lea.vmem [#allocation5], %s583_s8  ;;  %s691_s22 = sshll.u32 %s778_s10, 4  ;;  %s692_s22 = int_to_ptr.vmem [resolvable:$false] %s691_s22 }
  0x3e   : > { %v218_v14 = vld [vmem:[%s184_s21 + $0x30] sm:$0xff]  ;;  %567 = vmatprep.subr.bf16.mxu0 %v566_v6  ;;  %v570_v15 = vpack.c.bf16 %v222_v13, %v219_v12  ;;  %v223_v18 = vld [vmem:[%s184_s21 + $0x58] sm:$0xff]  ;;  %v224_v21 = vld [vmem:[%s1000_s2] sm:$0xff]  ;;  %s440_s19 = sshll.u32 %s206_s18, 4  ;;  %s584_s21 = smul.u32 1152, %s761_s15  ;;  %s944_s19 = int_to_ptr.vmem [resolvable:$true] %s440_s19 }
  0x3f   : > { %569 = vmatpush1.bf16.msra.mxu0 %v568_v10  ;;  %576 = vmatpush3.bf16.msra.mxu1 %v575_v11  ;;  %v572_v19 = vpack.c.bf16 %v221_v16, %v218_v14  ;;  %v578_v20 = vpack.c.bf16 %v223_v18, %v220_v17  ;;  %v226_v22 = vld [vmem:[%s1000_s2 + $0x10] sm:$0xff]  ;;  %v225_v23 = vld [vmem:[%s1000_s2 + $0x8] sm:$0xff]  ;;  %v209_v24 = vld [vmem:[%s999_s1] sm:$0xff]  ;;  %s687_s9 = scalar_lea.vmem %s944_s19, 1152  ;;  %s693_s23 = scalar_lea.vmem %s692_s22, 2304 }
  0x40   : > { %571 = vmatprep.subr.bf16.mxu0 %v570_v15  ;;  %577 = vmatprep.subr.bf16.mxu1 %v774_v0  ;;  %v210_v25 = vld [vmem:[%s999_s1 + $0x8] sm:$0xff]  ;;  %v211_v26 = vld [vmem:[%s999_s1 + $0x10] sm:$0xff]  ;;  %s949_s4 = scalar_lea.hbm %s1001_s3, %s584_s21  ;;  %p688_p8 = scmp.ne.s32.totalorder %s944_s19, %s687_s9 }
  0x41   : > { %229 = vperm.xlu0 %655, %v224_v21   ;;  %239 = vperm.xlu1 %656, %v226_v22   ;;  %p694_p5 = scmp.lt.s32.totalorder %s944_s19, %s692_s22  ;;  %p695_p13 = scmp.lt.s32.totalorder %s693_s23, %s687_s9 }
  0x42   : > { %p689_p11 = pnand %p688_p8, %p1009_p9 }
  0x43   : > { %573 = vmatpush1.bf16.msra.mxu0 %v572_v19  ;;  %579 = vmatpush3.bf16.msra.mxu1 %v578_v20  ;;  %p696_p2 = por %p695_p13, %p694_p5 }
  0x44   : > { %p690_p0 = pneg %p689_p11 }
  0x45   : > { %234 = vperm.xlu0 %655, %v225_v23  }
  0x46   : > { %533 = vmatmul.mubr.msk.f32.vlgmr.msra.gmra.mrb[0].mxu0 %vm242_vm1, %v209_v24  ;;  %558 = vmatmul.mubr.msk.f32.vlgmr.msra.gmra.mrb[0].mxu1 %vm242_vm1, %v209_v24  ;;  %p697_p4 = pnand %p696_p2, %p690_p0 }
  0x47   : > { %322 = vmatprep.mubr.f32.mxu0 %v775_v1  ;;  %560 = vmatprep.mubr.msk.f32.mxu1 %vm776_vm0, %v775_v1 }
  0x4a   : > { %534 = vmatmul.mubr.msk.f32.gmra.mrb[2].mxu0 %vm242_vm1, %v210_v25  ;;  %561 = vmatmul.mubr.msk.f32.gmra.mrb[2].mxu1 %vm242_vm1, %v210_v25 }
  0x4b   : > { %328 = vmatprep.mubr.f32.mxu0 %v775_v1  ;;  %563 = vmatprep.mubr.msk.f32.mxu1 %vm776_vm0, %v775_v1 }
  0x4e   : > { %535 = vmatmul.mubr.msk.f32.gmra.mrb[4].mxu0 %vm242_vm1, %v211_v26  ;;  %564 = vmatmul.mubr.msk.f32.gmra.mrb[4].mxu1 %vm242_vm1, %v211_v26 }
  0xc0   : > { %v230_v27 = vpop.permute.xlu0 %229  ;;  %v240_v43 = vpop.permute.xlu1 %239 }
  0xc4   : > { %v235_v35 = vpop.permute.xlu0 %234 }
 0x119   : > { %v318_v28 = vpop.f32.mrb[0].mxu0  ;;  %v401_v29 = vpop.f32.mrb[0].mxu1 }
 0x11a   : > { %v319_v30 = vadd.f32 %v318_v28, %v230_v27  ;;  %v402_v31 = vadd.f32 %v401_v29, %v230_v27  ;;  %v320_v32 = vpop.f32.mrb[1].mxu0  ;;  %v559_v33 = vpop.f32.mrb[1].mxu1 }
 0x11b   : > { %v321_v34 = vadd.f32 %v320_v32, %v230_v27 }
 0x11c   : > { %415 = vst [vmem:[%s206_s18] sm:$0xff] %v319_v30  ;;  %417 = vst [vmem:[%s206_s18 + $0x10] sm:$0xff] %v402_v31 }
 0x11d   : > { %416 = vst [vmem:[%s206_s18 + $0x8] sm:$0xff] %v321_v34  ;;  %v324_v36 = vpop.f32.mrb[2].mxu0  ;;  %v406_v37 = vpop.f32.mrb[2].mxu1 }
 0x11e   : > { %v325_v38 = vadd.f32 %v324_v36, %v235_v35  ;;  %v407_v39 = vadd.f32 %v406_v37, %v235_v35  ;;  %v326_v40 = vpop.f32.mrb[3].mxu0  ;;  %v562_v41 = vpop.f32.mrb[3].mxu1 }
 0x11f   : > { %v327_v42 = vadd.f32 %v326_v40, %v235_v35 }
 0x120   : > { %418 = vst [vmem:[%s206_s18 + $0x18] sm:$0xff] %v325_v38  ;;  %420 = vst [vmem:[%s206_s18 + $0x28] sm:$0xff] %v407_v39 }
 0x121   : > { %419 = vst [vmem:[%s206_s18 + $0x20] sm:$0xff] %v327_v42  ;;  %v330_v44 = vpop.f32.mrb[4].mxu0  ;;  %v411_v45 = vpop.f32.mrb[4].mxu1 }
 0x122   : > { %v331_v46 = vadd.f32 %v330_v44, %v240_v43  ;;  %v412_v47 = vadd.f32 %v411_v45, %v240_v43  ;;  %v332_v48 = vpop.f32.mrb[5].mxu0  ;;  %v565_v49 = vpop.f32.mrb[5].mxu1 }
 0x123   : > { %v333_v50 = vadd.f32 %v332_v48, %v240_v43 }
 0x124   : > { %421 = vst [vmem:[%s206_s18 + $0x30] sm:$0xff] %v331_v46  ;;  %423 = vst [vmem:[%s206_s18 + $0x40] sm:$0xff] %v412_v47 }
 0x125   : > { %422 = vst [vmem:[%s206_s18 + $0x38] sm:$0xff] %v333_v50 }
 0x126   : > { %700 = shalt.err (!%p697_p4)
}
 0x127   : > { %s701_s28 = scalar_lea.hbm %s949_s4, 1152  ;;  %s705_s5 = scalar_lea.hbm %s1001_s3, 2304 }
 0x128   : > { %p702_p6 = scmp.ne.s32.totalorder %s949_s4, %s701_s28  ;;  %p706_p12 = scmp.lt.u32.totalorder %s949_s4, %s1001_s3 }
 0x129   : > { %p707_p1 = scmp.lt.u32.totalorder %s705_s5, %s701_s28  ;;  %p709_p8 = scmp.lt.u32.totalorder %s701_s28, %s949_s4 }
 0x12a   : > { %p703_p7 = pnand %p702_p6, %p1009_p9 }
 0x12b   : > { %p708_p3 = por %p707_p1, %p706_p12 }
 0x12c   : > { %p704_p10 = pneg %p703_p7 }
 0x12d   : > { %p710_p11 = por %p709_p8, %p708_p3 }
 0x12f   : > { %p711_p0 = pnand %p710_p11, %p704_p10 }
 0x131   : > { %714 = shalt.err (!%p711_p0)
}
 0x132   : > { %s779_s18 = smov 384   ;;  %s780_s21 = smov 24  }
 0x133   : > { %587 = dma.vmem_to_hbm [thread:$0]  (%p1009_p9), %s944_s19, 1152, %s949_s4, %s425_s7, %s779_s18, %s779_s18, %s780_s21  }
 0x134 PF: > { %s455_s24 = sand.u32 1, %s749_s12   ;;  %p1010_p5 = scmp.ne.s32.totalorder %s1006_s27, 0 }
 0x135   : > { %p1011_p13 = scmp.ge.s32.totalorder %s769_s17, 2  ;;  %s456_s15 = scalar_lea.sflag [#allocation4], %s455_s24 }
 0x137   : > { %p594_p2 = pnand %p1011_p13, %p1010_p5 }
 0x139   : > { %744 = dma.done.wait (!%p594_p2), %s456_s15, 1152  }
 0x13a   : > { %746 = vsyncadd (!%p594_p2), %s456_s15, 4294966144  ;;  %s19_s17 = sadd.s32 1, %s769_s17   ;;  %s1012_s12 = smov %s753_s13 }
 0x13b   : > { %p16_p4 = scmp.ge.s32.totalorder %s19_s17, 4   ;;  %s1013_s13 = smov %s757_s14 }
 0x13c   : > { %s1014_s14 = smov %s857_s26  ;;  %s1015_s15 = smov %s765_s16 }
 0x13d   : > { %s1016_s16 = smov %s1018_s20  ;;  %18 = sbr.rel (!%p16_p4) target bundleno = 6 (0x6), region = 77 }
 0x144   :  { %461 = vsyncpa [#allocation3], 1 }
 0x145   :  { %463 = vsyncpa [#allocation3 + $0x1], 1 }
 0x146   :  { %464 = vsyncpa [#allocation4], 1 }
 0x147   :  { %466 = vsyncpa [#allocation4 + $0x1], 1 }

</bundles_post_ra>
